<compile_context>
chip_gen: v6e
topology: v6e:2x2x1
jax: 0.10.0
libtpu: 0.0.40
codegen_flags: <defaults>
</compile_context>

<pallas_src>
import jax
import jax.numpy as jnp
from jax.experimental import pallas as pl
from jax.experimental.pallas import tpu as pltpu


# ----------------------------------------------------------------------------
# Kernel 1: per-type partial sums of tanh(X @ W^T), split over two N-halves
# ----------------------------------------------------------------------------
def _make_score_kernel(tn, total_n, half_tiles):
    def kernel(x1_ref, x2_ref, w1_ref, w2_ref, o_ref, acc1_ref, acc2_ref):
        # x1_ref/x2_ref : (tn, d_in)    feature tiles of the two node types
        # w1_ref/w2_ref : (d_out, d_in) the two Linear weights
        # o_ref         : (1, 2, d_out) this half's partial sums (row per type)
        # acc*_ref      : (1, d_out) f32 running sums over this half's tiles
        h = pl.program_id(0)
        n = pl.program_id(1)

        @pl.when(n == 0)
        def _():
            acc1_ref[...] = jnp.zeros_like(acc1_ref)
            acc2_ref[...] = jnp.zeros_like(acc2_ref)

        g = h * half_tiles + n          # global tile index along N (may overflow)
        rem = total_n - g * tn          # #valid rows in this tile (<=0 -> none)

        dn = (((1,), (1,)), ((), ()))   # contract d_in with d_in  (X @ W^T)
        t1 = jnp.tanh(jax.lax.dot_general(
            x1_ref[...], w1_ref[...], dimension_numbers=dn,
            preferred_element_type=jnp.float32))
        t2 = jnp.tanh(jax.lax.dot_general(
            x2_ref[...], w2_ref[...], dimension_numbers=dn,
            preferred_element_type=jnp.float32))

        @pl.when(rem >= tn)             # full tile: plain row-sum, no mask cost
        def _():
            acc1_ref[...] += jnp.sum(t1, axis=0, keepdims=True)
            acc2_ref[...] += jnp.sum(t2, axis=0, keepdims=True)

        @pl.when(rem < tn)              # ragged tail (or empty overflow) tile
        def _():
            row = jax.lax.broadcasted_iota(jnp.int32, t1.shape, 0)
            m = row < rem               # rem <= 0 -> everything masked out
            acc1_ref[...] += jnp.sum(jnp.where(m, t1, 0.0), axis=0, keepdims=True)
            acc2_ref[...] += jnp.sum(jnp.where(m, t2, 0.0), axis=0, keepdims=True)

        @pl.when(n == pl.num_programs(1) - 1)
        def _():
            o_ref[0] = jnp.concatenate([acc1_ref[...], acc2_ref[...]], axis=0)

    return kernel


def type_partial_sums(f1, f2, w1, w2, *, tn_max=16 * 1024):
    """f1/f2: (N, d_in); w1/w2: (d_out, d_in).

    Returns (2, 2, d_out) f32: [half, node_type, :] partial sums of
    tanh(X @ W^T) over two halves of the N range (sum halves, /N for the mean).
    """
    N, d_in = f1.shape
    d_out = w1.shape[0]
    tn = N if N <= tn_max else tn_max           # tn_max is a multiple of 8
    tiles_total = pl.cdiv(N, tn)
    half_tiles = pl.cdiv(tiles_total, 2)

    def x_map(h, n):
        # Clamp so an overflow tile of the second half never DMAs out of
        # bounds; its contribution is fully masked in-kernel via `rem`.
        return (jnp.minimum(h * half_tiles + n, tiles_total - 1), 0)

    return pl.pallas_call(
        _make_score_kernel(tn, N, half_tiles),
        out_shape=jax.ShapeDtypeStruct((2, 2, d_out), jnp.float32),
        grid_spec=pltpu.PrefetchScalarGridSpec(
            num_scalar_prefetch=0,
            grid=(2, half_tiles),
            in_specs=[
                pl.BlockSpec((tn, d_in), x_map),
                pl.BlockSpec((tn, d_in), x_map),
                pl.BlockSpec((d_out, d_in), lambda h, n: (0, 0)),
                pl.BlockSpec((d_out, d_in), lambda h, n: (0, 0)),
            ],
            out_specs=pl.BlockSpec((1, 2, d_out), lambda h, n: (h, 0, 0)),
            scratch_shapes=[pltpu.VMEM((1, d_out), jnp.float32),
                            pltpu.VMEM((1, d_out), jnp.float32)],
        ),
        compiler_params=pltpu.CompilerParams(
            dimension_semantics=("parallel", "arbitrary"),
            vmem_limit_bytes=32 << 20),
    )(f1, f2, w1, w2)


# ----------------------------------------------------------------------------
# Kernel 2: out = beta[0] * feature1 + beta[1] * feature2   (lane-dense stream)
# ----------------------------------------------------------------------------
def _combine_kernel(beta_ref, x1_ref, x2_ref, o_ref):
    # beta_ref : SMEM (2,) f32 mixing weights (scalar reads)
    # x1/x2/o  : (1, tl) lane-dense slabs
    out = (beta_ref[0] * x1_ref[...].astype(jnp.float32)
           + beta_ref[1] * x2_ref[...].astype(jnp.float32))
    o_ref[...] = out.astype(o_ref.dtype)


def _pick_tile_len(L, tl_max):
    """Lane-dense (multiple-of-128) tile length; prefer an exact divisor of L
    so the last grid step is not a mostly-padded block."""
    if L <= tl_max:
        return L
    t = tl_max
    while t >= tl_max // 2:
        if L % t == 0:
            return t
        t -= 128
    return tl_max                       # ragged tail handled by masked stores


def weighted_combine(f1, f2, beta, *, tl_max=1 << 19):
    """f1/f2: (N, d); beta: (2,) -> beta[0]*f1 + beta[1]*f2 as (N, d)."""
    N, d = f1.shape
    L = N * d
    x1 = f1.reshape(1, L)               # free reshape -> lane-dense last dim
    x2 = f2.reshape(1, L)
    tl = _pick_tile_len(L, tl_max)

    out = pl.pallas_call(
        _combine_kernel,
        out_shape=jax.ShapeDtypeStruct((1, L), f1.dtype),
        grid_spec=pltpu.PrefetchScalarGridSpec(
            num_scalar_prefetch=0,
            grid=(pl.cdiv(L, tl),),
            in_specs=[
                pl.BlockSpec(memory_space=pltpu.MemorySpace.SMEM),  # beta scalars
                pl.BlockSpec((1, tl), lambda j: (0, j)),
                pl.BlockSpec((1, tl), lambda j: (0, j)),
            ],
            out_specs=pl.BlockSpec((1, tl), lambda j: (0, j)),
        ),
        compiler_params=pltpu.CompilerParams(
            dimension_semantics=("parallel",),
            vmem_limit_bytes=32 << 20),
    )(beta.astype(jnp.float32), x1, x2)
    return out.reshape(N, d)


# ----------------------------------------------------------------------------
# Full forward (tiny 2-element mean / a-dot / leaky_relu / softmax in JAX glue)
# ----------------------------------------------------------------------------
@jax.jit
def type_graph_attention(feature1, feature2, w_gene, w_hpo, a):
    """feature1/feature2: (N, in_dim); w_*: (out_dim, in_dim); a: (out_dim, 1)."""
    N = feature1.shape[0]

    # Kernel 1: per-half, per-type sums of tanh(X @ W^T) -> (2, 2, d_out)
    partial = type_partial_sums(feature1, feature2, w_gene, w_hpo)
    pooled = partial.sum(axis=0) * (1.0 / N)                     # (2, d_out) means
    a_row = a.reshape(1, -1).astype(jnp.float32)                 # (1, d_out)
    logits = jnp.sum(pooled * a_row, axis=-1)                    # (2,) exact f32
    att = jnp.where(logits > 0, logits, 0.01 * logits)           # leaky_relu
    beta = jax.nn.softmax(att)                                   # (2,)

    # Kernel 2: out = beta[0] * feature1 + beta[1] * feature2
    return weighted_combine(feature1, feature2, beta)


# ----------------------------------------------------------------------------
# Pure-JAX reference + deterministic demo
# ----------------------------------------------------------------------------
def reference_forward(feature1, feature2, w_gene, w_hpo, a):
    hp = jax.lax.Precision.HIGHEST
    n1 = jnp.tanh(jnp.matmul(feature1, w_gene.T, precision=hp)).mean(axis=0)
    n2 = jnp.tanh(jnp.matmul(feature2, w_hpo.T, precision=hp)).mean(axis=0)
    feat = jnp.stack([n1, n2], axis=0)                    # (2, out_dim)
    att = jnp.matmul(feat, a, precision=hp).reshape(-1)   # (2,)
    att = jnp.where(att > 0, att, 0.01 * att)
    att = jax.nn.softmax(att)
    return att[0] * feature1 + att[1] * feature2


def xavier_normal(key, shape, gain):
    fan_out, fan_in = shape
    std = gain * (2.0 / (fan_in + fan_out)) ** 0.5
    return std * jax.random.normal(key, shape, dtype=jnp.float32)


if __name__ == "__main__":
    N, in_dim, out_dim = 16, 32, 16

    key = jax.random.PRNGKey(0)
    k1, k2, kw1, kw2, ka = jax.random.split(key, 5)

    feature1 = jax.random.normal(k1, (N, in_dim), dtype=jnp.float32)
    feature2 = jax.random.normal(k2, (N, in_dim), dtype=jnp.float32)

    gain = 2.0 ** 0.5  # nn.init.calculate_gain('relu')
    w_gene = xavier_normal(kw1, (out_dim, in_dim), gain)
    w_hpo = xavier_normal(kw2, (out_dim, in_dim), gain)
    a = xavier_normal(ka, (out_dim, 1), gain)

    # TODO(synk): attention_drop is a stored hyper-parameter in the reference
    # module but never applied in its forward pass, so it is omitted here.

    out = type_graph_attention(feature1, feature2, w_gene, w_hpo, a)
    out = jax.block_until_ready(out)

    ref = reference_forward(feature1, feature2, w_gene, w_hpo, a)

    assert out.shape == (N, in_dim)
    assert bool(jnp.all(jnp.isfinite(out)))
    assert bool(jnp.allclose(out, ref, atol=5e-4, rtol=5e-4))

    print("KERNEL_OK")
</pallas_src>

<mosaic_0001>
module attributes {stable_mosaic.version = 11 : i64} {
  func.func @kernel(%arg0: i32, %arg1: i32, %arg2: memref<16x32xf32, #tpu.memory_space<vmem>>, %arg3: memref<16x32xf32, #tpu.memory_space<vmem>>, %arg4: memref<16x32xf32, #tpu.memory_space<vmem>>, %arg5: memref<16x32xf32, #tpu.memory_space<vmem>>, %arg6: memref<1x2x16xf32, #tpu.memory_space<vmem>>, %arg7: memref<1x16xf32, #tpu.memory_space<vmem>>, %arg8: memref<1x16xf32, #tpu.memory_space<vmem>>) attributes {dimension_semantics = [#tpu.dimension_semantics<parallel>, #tpu.dimension_semantics<arbitrary>], iteration_bounds = array<i64: 2, 1>, scalar_prefetch = 0 : i64, scratch_operands = 2 : i64, tpu.core_type = #tpu.core_type<tc>, window_params = [{transform_indices = @transform_0, window_bounds = array<i64: 16, 32>}, {transform_indices = @transform_1, window_bounds = array<i64: 16, 32>}, {pipeline_mode = #tpu.pipeline_mode<synchronous>, transform_indices = @transform_2, window_bounds = array<i64: 16, 32>}, {pipeline_mode = #tpu.pipeline_mode<synchronous>, transform_indices = @transform_3, window_bounds = array<i64: 16, 32>}, {transform_indices = @transform_4, window_bounds = array<i64: 1, 2, 16>}]} {
    %c0_i32 = arith.constant 0 : i32
    %0 = arith.cmpi eq, %arg1, %c0_i32 : i32
    %1 = arith.extui %0 : i1 to i32
    %c0_i32_0 = arith.constant 0 : i32
    %2 = arith.cmpi ne, %1, %c0_i32_0 : i32
    scf.if %2 {
      %cst_16 = arith.constant 0.000000e+00 : f32
      %24 = vector.broadcast %cst_16 : f32 to vector<1x16xf32>
      %c0_17 = arith.constant 0 : index
      %c0_18 = arith.constant 0 : index
      %25 = vector.load %arg7[%c0_17, %c0_18] : memref<1x16xf32, #tpu.memory_space<vmem>>, vector<1x16xf32>
      tpu.vector_store %arg7[%c0_17, %c0_18], %24 {strides = array<i32>} : memref<1x16xf32, #tpu.memory_space<vmem>>, vector<1x16xf32>,
      %cst_19 = arith.constant 0.000000e+00 : f32
      %26 = vector.broadcast %cst_19 : f32 to vector<1x16xf32>
      %c0_20 = arith.constant 0 : index
      %c0_21 = arith.constant 0 : index
      %27 = vector.load %arg8[%c0_20, %c0_21] : memref<1x16xf32, #tpu.memory_space<vmem>>, vector<1x16xf32>
      tpu.vector_store %arg8[%c0_20, %c0_21], %26 {strides = array<i32>} : memref<1x16xf32, #tpu.memory_space<vmem>>, vector<1x16xf32>,
    } else {
    }
    %c1_i32 = arith.constant 1 : i32
    %3 = arith.muli %arg0, %c1_i32 : i32
    %4 = arith.addi %3, %arg1 : i32
    %c16_i32 = arith.constant 16 : i32
    %5 = arith.muli %4, %c16_i32 : i32
    %c16_i32_1 = arith.constant 16 : i32
    %6 = arith.subi %c16_i32_1, %5 : i32
    %c0 = arith.constant 0 : index
    %c0_2 = arith.constant 0 : index
    %7 = vector.load %arg2[%c0, %c0_2] : memref<16x32xf32, #tpu.memory_space<vmem>>, vector<16x32xf32>
    %c0_3 = arith.constant 0 : index
    %c0_4 = arith.constant 0 : index
    %8 = vector.load %arg4[%c0_3, %c0_4] : memref<16x32xf32, #tpu.memory_space<vmem>>, vector<16x32xf32>
    %cst = arith.constant dense<0.000000e+00> : vector<16x16xf32>
    %9 = tpu.matmul %7, %8, %cst {dimension_numbers = #tpu.dot_dimension_numbers<[1], [1], [0], [0], [0, 0, 1, 0], [], []>} : vector<16x32xf32>, vector<16x32xf32>, vector<16x16xf32> -> vector<16x16xf32>
    %10 = math.tanh %9 : vector<16x16xf32>
    %c0_5 = arith.constant 0 : index
    %c0_6 = arith.constant 0 : index
    %11 = vector.load %arg3[%c0_5, %c0_6] : memref<16x32xf32, #tpu.memory_space<vmem>>, vector<16x32xf32>
    %c0_7 = arith.constant 0 : index
    %c0_8 = arith.constant 0 : index
    %12 = vector.load %arg5[%c0_7, %c0_8] : memref<16x32xf32, #tpu.memory_space<vmem>>, vector<16x32xf32>
    %cst_9 = arith.constant dense<0.000000e+00> : vector<16x16xf32>
    %13 = tpu.matmul %11, %12, %cst_9 {dimension_numbers = #tpu.dot_dimension_numbers<[1], [1], [0], [0], [0, 0, 1, 0], [], []>} : vector<16x32xf32>, vector<16x32xf32>, vector<16x16xf32> -> vector<16x16xf32>
    %14 = math.tanh %13 : vector<16x16xf32>
    %c16_i32_10 = arith.constant 16 : i32
    %15 = arith.cmpi sge, %6, %c16_i32_10 : i32
    %16 = arith.extui %15 : i1 to i32
    %c0_i32_11 = arith.constant 0 : i32
    %17 = arith.cmpi ne, %16, %c0_i32_11 : i32
    scf.if %17 {
      %c0_16 = arith.constant 0 : index
      %c0_17 = arith.constant 0 : index
      %24 = vector.load %arg7[%c0_16, %c0_17] : memref<1x16xf32, #tpu.memory_space<vmem>>, vector<1x16xf32>
      %cst_18 = arith.constant dense<0.000000e+00> : vector<16xf32>
      %25 = vector.multi_reduction <add>, %10, %cst_18 [0] : vector<16x16xf32> to vector<16xf32>
      %26 = vector.shape_cast %25 : vector<16xf32> to vector<1x16xf32>
      %27 = arith.addf %24, %26 : vector<1x16xf32>
      %c0_19 = arith.constant 0 : index
      %c0_20 = arith.constant 0 : index
      %28 = vector.load %arg7[%c0_19, %c0_20] : memref<1x16xf32, #tpu.memory_space<vmem>>, vector<1x16xf32>
      tpu.vector_store %arg7[%c0_19, %c0_20], %27 {strides = array<i32>} : memref<1x16xf32, #tpu.memory_space<vmem>>, vector<1x16xf32>,
      %c0_21 = arith.constant 0 : index
      %c0_22 = arith.constant 0 : index
      %29 = vector.load %arg8[%c0_21, %c0_22] : memref<1x16xf32, #tpu.memory_space<vmem>>, vector<1x16xf32>
      %cst_23 = arith.constant dense<0.000000e+00> : vector<16xf32>
      %30 = vector.multi_reduction <add>, %14, %cst_23 [0] : vector<16x16xf32> to vector<16xf32>
      %31 = vector.shape_cast %30 : vector<16xf32> to vector<1x16xf32>
      %32 = arith.addf %29, %31 : vector<1x16xf32>
      %c0_24 = arith.constant 0 : index
      %c0_25 = arith.constant 0 : index
      %33 = vector.load %arg8[%c0_24, %c0_25] : memref<1x16xf32, #tpu.memory_space<vmem>>, vector<1x16xf32>
      tpu.vector_store %arg8[%c0_24, %c0_25], %32 {strides = array<i32>} : memref<1x16xf32, #tpu.memory_space<vmem>>, vector<1x16xf32>,
    } else {
    }
    %c16_i32_12 = arith.constant 16 : i32
    %18 = arith.cmpi slt, %6, %c16_i32_12 : i32
    %19 = arith.extui %18 : i1 to i32
    %c0_i32_13 = arith.constant 0 : i32
    %20 = arith.cmpi ne, %19, %c0_i32_13 : i32
    scf.if %20 {
      %24 = tpu.iota {dimensions = array<i32: 0>} : vector<16x16xi32>
      %25 = vector.broadcast %6 : i32 to vector<16x16xi32>
      %26 = arith.cmpi slt, %24, %25 : vector<16x16xi32>
      %c0_16 = arith.constant 0 : index
      %c0_17 = arith.constant 0 : index
      %27 = vector.load %arg7[%c0_16, %c0_17] : memref<1x16xf32, #tpu.memory_space<vmem>>, vector<1x16xf32>
      %cst_18 = arith.constant 0.000000e+00 : f32
      %28 = vector.broadcast %cst_18 : f32 to vector<16x16xf32>
      %29 = arith.select %26, %10, %28 : vector<16x16xi1>, vector<16x16xf32>
      %cst_19 = arith.constant dense<0.000000e+00> : vector<16xf32>
      %30 = vector.multi_reduction <add>, %29, %cst_19 [0] : vector<16x16xf32> to vector<16xf32>
      %31 = vector.shape_cast %30 : vector<16xf32> to vector<1x16xf32>
      %32 = arith.addf %27, %31 : vector<1x16xf32>
      %c0_20 = arith.constant 0 : index
      %c0_21 = arith.constant 0 : index
      %33 = vector.load %arg7[%c0_20, %c0_21] : memref<1x16xf32, #tpu.memory_space<vmem>>, vector<1x16xf32>
      tpu.vector_store %arg7[%c0_20, %c0_21], %32 {strides = array<i32>} : memref<1x16xf32, #tpu.memory_space<vmem>>, vector<1x16xf32>,
      %c0_22 = arith.constant 0 : index
      %c0_23 = arith.constant 0 : index
      %34 = vector.load %arg8[%c0_22, %c0_23] : memref<1x16xf32, #tpu.memory_space<vmem>>, vector<1x16xf32>
      %cst_24 = arith.constant 0.000000e+00 : f32
      %35 = vector.broadcast %cst_24 : f32 to vector<16x16xf32>
      %36 = arith.select %26, %14, %35 : vector<16x16xi1>, vector<16x16xf32>
      %cst_25 = arith.constant dense<0.000000e+00> : vector<16xf32>
      %37 = vector.multi_reduction <add>, %36, %cst_25 [0] : vector<16x16xf32> to vector<16xf32>
      %38 = vector.shape_cast %37 : vector<16xf32> to vector<1x16xf32>
      %39 = arith.addf %34, %38 : vector<1x16xf32>
      %c0_26 = arith.constant 0 : index
      %c0_27 = arith.constant 0 : index
      %40 = vector.load %arg8[%c0_26, %c0_27] : memref<1x16xf32, #tpu.memory_space<vmem>>, vector<1x16xf32>
      tpu.vector_store %arg8[%c0_26, %c0_27], %39 {strides = array<i32>} : memref<1x16xf32, #tpu.memory_space<vmem>>, vector<1x16xf32>,
    } else {
    }
    %c0_i32_14 = arith.constant 0 : i32
    %21 = arith.cmpi eq, %arg1, %c0_i32_14 : i32
    %22 = arith.extui %21 : i1 to i32
    %c0_i32_15 = arith.constant 0 : i32
    %23 = arith.cmpi ne, %22, %c0_i32_15 : i32
    scf.if %23 {
      %c0_16 = arith.constant 0 : index
      %c0_17 = arith.constant 0 : index
      %24 = vector.load %arg7[%c0_16, %c0_17] : memref<1x16xf32, #tpu.memory_space<vmem>>, vector<1x16xf32>
      %c0_18 = arith.constant 0 : index
      %c0_19 = arith.constant 0 : index
      %25 = vector.load %arg8[%c0_18, %c0_19] : memref<1x16xf32, #tpu.memory_space<vmem>>, vector<1x16xf32>
      %26 = tpu.concatenate %24, %25 in 0 : vector<1x16xf32>, vector<1x16xf32> -> vector<2x16xf32>
      %c0_20 = arith.constant 0 : index
      %c0_21 = arith.constant 0 : index
      %c0_22 = arith.constant 0 : index
      %27 = vector.load %arg6[%c0_20, %c0_21, %c0_22] : memref<1x2x16xf32, #tpu.memory_space<vmem>>, vector<1x2x16xf32>
      %28 = vector.shape_cast %27 : vector<1x2x16xf32> to vector<2x16xf32>
      %29 = vector.shape_cast %26 : vector<2x16xf32> to vector<1x2x16xf32>
      tpu.vector_store %arg6[%c0_20, %c0_21, %c0_22], %29 {strides = array<i32>} : memref<1x2x16xf32, #tpu.memory_space<vmem>>, vector<1x2x16xf32>,
    } else {
    }
    return
  }
  func.func @transform_0(%arg0: i32, %arg1: i32) -> (i32, i32) {
    %c1_i32 = arith.constant 1 : i32
    %0 = arith.muli %arg0, %c1_i32 : i32
    %1 = arith.addi %0, %arg1 : i32
    %c0_i32 = arith.constant 0 : i32
    %2 = arith.minsi %1, %c0_i32 : i32
    %c0_i32_0 = arith.constant 0 : i32
    %c0_i32_1 = arith.constant 0 : i32
    return %2, %c0_i32_0 : i32, i32
  }
  func.func @transform_1(%arg0: i32, %arg1: i32) -> (i32, i32) {
    %c1_i32 = arith.constant 1 : i32
    %0 = arith.muli %arg0, %c1_i32 : i32
    %1 = arith.addi %0, %arg1 : i32
    %c0_i32 = arith.constant 0 : i32
    %2 = arith.minsi %1, %c0_i32 : i32
    %c0_i32_0 = arith.constant 0 : i32
    %c0_i32_1 = arith.constant 0 : i32
    return %2, %c0_i32_0 : i32, i32
  }
  func.func @transform_2(%arg0: i32, %arg1: i32) -> (i32, i32) {
    %c0_i32 = arith.constant 0 : i32
    %c0_i32_0 = arith.constant 0 : i32
    %c0_i32_1 = arith.constant 0 : i32
    return %c0_i32, %c0_i32_0 : i32, i32
  }
  func.func @transform_3(%arg0: i32, %arg1: i32) -> (i32, i32) {
    %c0_i32 = arith.constant 0 : i32
    %c0_i32_0 = arith.constant 0 : i32
    %c0_i32_1 = arith.constant 0 : i32
    return %c0_i32, %c0_i32_0 : i32, i32
  }
  func.func @transform_4(%arg0: i32, %arg1: i32) -> (i32, i32, i32) {
    %c0_i32 = arith.constant 0 : i32
    %c0_i32_0 = arith.constant 0 : i32
    %c0_i32_1 = arith.constant 0 : i32
    return %arg0, %c0_i32, %c0_i32_0 : i32, i32, i32
  }
}

module attributes {stable_mosaic.version = 11 : i64} {
  func.func @_combine_kernel(%arg0: i32, %arg1: memref<2xf32, #tpu.memory_space<smem>>, %arg2: memref<1x512xf32, #tpu.memory_space<vmem>>, %arg3: memref<1x512xf32, #tpu.memory_space<vmem>>, %arg4: memref<1x512xf32, #tpu.memory_space<vmem>>) attributes {dimension_semantics = [#tpu.dimension_semantics<parallel>], iteration_bounds = array<i64: 1>, scalar_prefetch = 0 : i64, scratch_operands = 0 : i64, tpu.core_type = #tpu.core_type<tc>, window_params = [{transform_indices = @transform_0, window_bounds = array<i64: 2>}, {transform_indices = @transform_1, window_bounds = array<i64: 1, 512>}, {transform_indices = @transform_2, window_bounds = array<i64: 1, 512>}, {transform_indices = @transform_3, window_bounds = array<i64: 1, 512>}]} {
    %c0 = arith.constant 0 : index
    %0 = memref.load %arg1[%c0] : memref<2xf32, #tpu.memory_space<smem>>
    %c0_0 = arith.constant 0 : index
    %c0_1 = arith.constant 0 : index
    %1 = vector.load %arg2[%c0_0, %c0_1] : memref<1x512xf32, #tpu.memory_space<vmem>>, vector<1x512xf32>
    %2 = vector.broadcast %0 : f32 to vector<1x512xf32>
    %3 = arith.mulf %2, %1 : vector<1x512xf32>
    %c1 = arith.constant 1 : index
    %4 = memref.load %arg1[%c1] : memref<2xf32, #tpu.memory_space<smem>>
    %c0_2 = arith.constant 0 : index
    %c0_3 = arith.constant 0 : index
    %5 = vector.load %arg3[%c0_2, %c0_3] : memref<1x512xf32, #tpu.memory_space<vmem>>, vector<1x512xf32>
    %6 = vector.broadcast %4 : f32 to vector<1x512xf32>
    %7 = arith.mulf %6, %5 : vector<1x512xf32>
    %8 = arith.addf %3, %7 : vector<1x512xf32>
    %c0_4 = arith.constant 0 : index
    %c0_5 = arith.constant 0 : index
    %9 = vector.load %arg4[%c0_4, %c0_5] : memref<1x512xf32, #tpu.memory_space<vmem>>, vector<1x512xf32>
    tpu.vector_store %arg4[%c0_4, %c0_5], %8 {strides = array<i32>} : memref<1x512xf32, #tpu.memory_space<vmem>>, vector<1x512xf32>,
    return
  }
  func.func @transform_0(%arg0: i32) -> i32 {
    %c0_i32 = arith.constant 0 : i32
    %c0_i32_0 = arith.constant 0 : i32
    return %c0_i32 : i32
  }
  func.func @transform_1(%arg0: i32) -> (i32, i32) {
    %c0_i32 = arith.constant 0 : i32
    %c0_i32_0 = arith.constant 0 : i32
    return %c0_i32, %arg0 : i32, i32
  }
  func.func @transform_2(%arg0: i32) -> (i32, i32) {
    %c0_i32 = arith.constant 0 : i32
    %c0_i32_0 = arith.constant 0 : i32
    return %c0_i32, %arg0 : i32, i32
  }
  func.func @transform_3(%arg0: i32) -> (i32, i32) {
    %c0_i32 = arith.constant 0 : i32
    %c0_i32_0 = arith.constant 0 : i32
    return %c0_i32, %arg0 : i32, i32
  }
}

</mosaic_0001>

<bundles_post_ra>
// kernel: type_graph_attention.3
= control target key start
LH: loop header
LB: loop body
LE: loop exit
PB: predicated region body
PF: predicated region fallthrough
CT: control target
= control target key end

     0   :  { %8 = vsyncpa [#allocation3], 0  ;;  %s95_s0 = inlined_call_operand.vmem [shape: f32[2], index: 0, kind: input, shape index: {}]   ;;  %s96_s1 = inlined_call_operand.vmem [shape: f32[1,512], index: 1, kind: input, shape index: {}]   ;;  %s97_s2 = inlined_call_operand.vmem [shape: f32[1,512], index: 2, kind: input, shape index: {}]   ;;  %s98_s3 = inlined_call_operand.vmem [shape: f32[1,512], index: 3, kind: output, shape index: {}]  }
   0x1   :  { %s15_s14 = sshll.u32 %s95_s0, 4  ;;  %s16_s14 = int_to_ptr.vmem [resolvable:$true] %s15_s14 }
   0x2   :  { %s48_s15 = scalar_lea.vmem %s16_s14, 16  ;;  %p53_p1 = scmp.lt.s32.totalorder %s16_s14, %s16_s14 }
   0x3   :  { %p49_p0 = scmp.ne.s32.totalorder %s16_s14, %s48_s15  ;;  %p54_p2 = scmp.lt.s32.totalorder %s48_s15, %s48_s15 }
   0x5   :  { %p55_p3 = por %p54_p2, %p53_p1 }
   0x7   :  { %p56_p4 = pnand %p55_p3, %p49_p0 }
   0x9   :  { %59 = shalt.err (!%p56_p4)
}
   0xa   :  { %s62_s16 = smov [#allocation2]  }
   0xb   :  { %18 = dma.vmem_to_smem %s16_s14, 16, %s62_s16, [#allocation3]  }
   0xc   :  { %60 = dma.done.wait [#allocation3], 16  }
   0xd   :  { %61 = vsyncadd [#allocation3], 4294967280 }
   0xe   :  { %26 = sfence }
   0xf   :  { %s27_s17 = sld [smem:[#allocation2]]  ;;  %v28_v0 = vld [vmem:[%s96_s1] sm:$0xf]  ;;  %v36_v2 = vlaneseq }
  0x10   :  { %s46_s18 = sld [smem:[#allocation2 + $0x1]]  ;;  %v32_v1 = vld [vmem:[%s97_s2] sm:$0xf] }
  0x11   :  { %vm38_vm0 = vcmp.lt.s32.totalorder %v36_v2, 512 }
  0x15   :  { %v29_v3 = vstv %s27_s17 }
  0x16   :  { %v30_v4 = vmul.f32 %v29_v3, %v28_v0  ;;  %v33_v5 = vstv %s46_s18 }
  0x17   :  { %v34_v6 = vmul.f32 %v33_v5, %v32_v1 }
  0x19   :  { %v35_v7 = vadd.f32 %v34_v6, %v30_v4 }
  0x1b   :  { %40 = vst.msk [vmem:[%s98_s3] sm:$0xf] %vm38_vm0, %v35_v7 }
  0x1c   :  { %45 = vsyncpa [#allocation3], 1 }

// kernel: type_graph_attention.2
= control target key start
LH: loop header
LB: loop body
LE: loop exit
PB: predicated region body
PF: predicated region fallthrough
CT: control target
= control target key end

     0   :  { %9 = vsyncpa [#allocation5], 0  ;;  %s1276_s0 = inlined_call_operand.hbm [shape: f32[16,32], index: 0, kind: input, shape index: {}]   ;;  %s1277_s1 = inlined_call_operand.hbm [shape: f32[16,32], index: 1, kind: input, shape index: {}]   ;;  %s1278_s2 = inlined_call_operand.hbm [shape: f32[16,32], index: 2, kind: input, shape index: {}]   ;;  %s1279_s3 = inlined_call_operand.hbm [shape: f32[16,32], index: 3, kind: input, shape index: {}]   ;;  %s1280_s4 = inlined_call_operand.vmem [shape: f32[2,2,16], index: 4, kind: output, shape index: {}]  }
   0x1   :  { %11 = vsyncpa [#allocation5 + $0x1], 0 }
   0x2   :  { %12 = vsyncpa [#allocation7], 0 }
   0x3   :  { %14 = vsyncpa [#allocation7 + $0x1], 0 }
   0x4   :  { %15 = vsyncpa [#allocation10], 0  ;;  %s1069_s15 = smov 0   ;;  %s1071_s16 = smov 0  }
   0x5   :  { %s1073_s17 = smov 0   ;;  %s1075_s18 = smov 0  }
   0x6   :  { %s1077_s19 = smov 0  }
   0x7 LB: > { %s720_s20 = sadd.s32 4294967295, %s1035_s19   ;;  %p59_p0 = scmp.ne.s32.totalorder %s1023_s16, %s1019_s15  ;;  %s1035_s19 = sphi %s1077_s19, %s21_s19   ;;  %s1031_s18 = sphi %s1075_s18, %s1295_s18   ;;  %s1027_s17 = sphi %s1073_s17, %s1294_s17   ;;  %s1023_s16 = sphi %s1071_s16, %s1266_s16   ;;  %s1019_s15 = sphi %s1069_s15, %s1293_s15  }
   0x8   : > { %p1096_p1 = scmp.eq.s32.totalorder %s720_s20, 0  ;;  %p722_p2 = scmp.ge.s32.totalorder %s1035_s19, 1 }
   0x9   : > { %p170_p3 = scmp.lt.s32.totalorder %s1035_s19, 3  ;;  %s1037_s24 = smov [#allocation8]  }
   0xa   : > { %s1285_s21 = scalar_select %p1096_p1, 1, 0 }
   0xb   : > { %p1104_p4 = por %p1096_p1, %p59_p0  ;;  %p1108_p5 = pnand %p722_p2, %p170_p3 }
   0xc   : > { %s182_s25 = sshll.u32 %s1037_s24, 4  ;;  %s1038_s27 = smov [#allocation9]   ;;  %s183_s25 = int_to_ptr.vmem [resolvable:$true] %s182_s25 }
   0xd   : > { %s1286_s22 = scalar_select %p1104_p4, 1, 0 }
   0xe   : > { %s1287_s23 = scalar_select %p1108_p5, 1, 0 }
   0xf   : > { %p788_p6 = pneg %p1108_p5  ;;  %s195_s28 = sshll.u32 %s1038_s27, 4  ;;  %s196_s28 = int_to_ptr.vmem [resolvable:$true] %s195_s28 }
  0x10   : > { %s879_s29 = scalar_lea.vmem %s183_s25, 256  ;;  %p887_p12 = scmp.lt.s32.totalorder %s183_s25, %s183_s25 }
  0x11   : > { %p1116_p7 = pnand %p788_p6, %p1096_p1  ;;  %p880_p9 = scmp.ne.s32.totalorder %s183_s25, %s879_s29 }
  0x12   : > { %p888_p13 = scmp.lt.s32.totalorder %s879_s29, %s879_s29 }
  0x13   : > { %p870_p8 = pneg %p1116_p7 }
  0x14   : > { %p889_p0 = por %p888_p13, %p887_p12 }
  0x15   : > { %p882_p10 = pnand %p880_p9, %p870_p8 }
  0x17   : > { %p883_p11 = pneg %p882_p10 }
  0x19   : > { %p890_p2 = pnand %p889_p0, %p883_p11 }
  0x1b   : > { %893 = shalt.err (!%p890_p2)
}
  0x1c   : > { %s1039_s30 = smov 128   ;;  %s1040_s5 = smov 8  }
  0x1d   : > { %791 = dma.hbm_to_vmem [thread:$0]  (!%p1116_p7), %s1278_s2, 256, %s183_s25, [#allocation7], %s1039_s30, %s1039_s30, %s1040_s5  }
  0x1e   : > { %s905_s8 = scalar_lea.vmem %s196_s28, 256  ;;  %p913_p10 = scmp.lt.s32.totalorder %s196_s28, %s196_s28 }
  0x1f   : > { %p906_p3 = scmp.ne.s32.totalorder %s196_s28, %s905_s8  ;;  %p914_p11 = scmp.lt.s32.totalorder %s905_s8, %s905_s8 }
  0x21   : > { %p908_p6 = pnand %p906_p3, %p870_p8  ;;  %p915_p12 = por %p914_p11, %p913_p10 }
  0x23   : > { %p909_p9 = pneg %p908_p6 }
  0x25   : > { %p916_p13 = pnand %p915_p12, %p909_p9 }
  0x27   : > { %919 = shalt.err (!%p916_p13)
}
  0x28   : > { %794 = dma.hbm_to_vmem [thread:$0]  (!%p1116_p7), %s1279_s3, 256, %s196_s28, [#allocation10], %s1039_s30, %s1039_s30, %s1040_s5  }
  0x29   : > { %s33_s11 = sadd.s32 1, %s1031_s18  ;;  %p1016_p0 = scmp.ne.s32.totalorder %s1023_s16, 0 }
  0x2a   : > { %p35_p8 = scmp.ge.s32.totalorder %s33_s11, 2  ;;  %p54_p2 = scmp.eq.s32.totalorder %s1035_s19, 0 }
  0x2b   : > { %p804_p3 = scmp.lt.s32.totalorder %s1035_s19, 2  ;;  %s1041_s12 = smov [#allocation4]  }
  0x2c   : > { %s1297_s11 = smov (%p35_p8, %s33_s11), 0  ;;  %p55_p6 = por %p1016_p0, %p54_p2 }
  0x2d   : > { %s223_s13 = sshll.u32 %s1041_s12, 4  ;;  %s1042_s15 = smov [#allocation6]   ;;  %s224_s13 = int_to_ptr.vmem [resolvable:$true] %s223_s13 }
  0x2e   : > { %p1150_p9 = pnand %p804_p3, %p55_p6  ;;  %s247_s24 = sshll.u32 %s1042_s15, 4  ;;  %s248_s24 = int_to_ptr.vmem [resolvable:$true] %s247_s24 }
  0x2f   : > { %s920_s27 = scalar_lea.hbm %s1276_s0, 256 }
  0x30   : > { %p921_p7 = scmp.ne.s32.totalorder %s1276_s0, %s920_s27  ;;  %p922_p10 = pneg %p1150_p9 }
  0x31   : > { %p927_p13 = scmp.lt.s32.totalorder %s920_s27, %s920_s27 }
  0x32   : > { %p923_p11 = pnand %p922_p10, %p921_p7 }
  0x34   : > { %p924_p12 = pneg %p923_p11 }
  0x36   : > { %p929_p8 = pnand %p927_p13, %p924_p12 }
  0x38   : > { %932 = shalt.err (!%p929_p8)
}
  0x39   : > { %s933_s6 = scalar_lea.vmem %s224_s13, 256  ;;  %s940_s7 = scalar_lea.vmem %s224_s13, 512 }
  0x3a   : > { %p934_p0 = scmp.ne.s32.totalorder %s224_s13, %s933_s6  ;;  %p941_p6 = scmp.lt.s32.totalorder %s224_s13, %s224_s13 }
  0x3b   : > { %p942_p1 = scmp.lt.s32.totalorder %s940_s7, %s933_s6 }
  0x3c   : > { %p936_p2 = pnand %p934_p0, %p922_p10 }
  0x3d   : > { %p943_p4 = por %p942_p1, %p941_p6 }
  0x3e   : > { %p937_p3 = pneg %p936_p2 }
  0x40   : > { %p944_p5 = pnand %p943_p4, %p937_p3 }
  0x42   : > { %947 = shalt.err (!%p944_p5)
}
  0x43   : > { %798 = dma.hbm_to_vmem [thread:$0]  (!%p1150_p9), %s1276_s0, 256, %s224_s13, [#allocation5], %s1039_s30, %s1039_s30, %s1040_s5  }
  0x44   : > { %s233_s10 = sand.u32 1, %s1035_s19   ;;  %s948_s26 = scalar_lea.hbm %s1277_s1, 256 }
  0x45   : > { %s234_s12 = scalar_lea.sflag [#allocation7], %s233_s10  ;;  %p949_p1 = scmp.ne.s32.totalorder %s1277_s1, %s948_s26 }
  0x46   : > { %p955_p7 = scmp.lt.s32.totalorder %s948_s26, %s948_s26 }
  0x47   : > { %p951_p4 = pnand %p949_p1, %p922_p10 }
  0x49   : > { %p952_p5 = pneg %p951_p4 }
  0x4b   : > { %p957_p11 = pnand %p955_p7, %p952_p5 }
  0x4d   : > { %960 = shalt.err (!%p957_p11)
}
  0x4e   : > { %s961_s29 = scalar_lea.vmem %s248_s24, 256  ;;  %s968_s13 = scalar_lea.vmem %s248_s24, 512 }
  0x4f   : > { %p962_p12 = scmp.ne.s32.totalorder %s248_s24, %s961_s29  ;;  %p969_p0 = scmp.lt.s32.totalorder %s248_s24, %s248_s24 }
  0x50   : > { %p970_p2 = scmp.lt.s32.totalorder %s968_s13, %s961_s29 }
  0x51   : > { %p964_p13 = pnand %p962_p12, %p922_p10 }
  0x52   : > { %p971_p3 = por %p970_p2, %p969_p0 }
  0x53   : > { %p965_p8 = pneg %p964_p13 }
  0x55   : > { %p972_p6 = pnand %p971_p3, %p965_p8 }
  0x57   : > { %975 = shalt.err (!%p972_p6)
}
  0x58   : > { %801 = dma.hbm_to_vmem [thread:$0]  (!%p1150_p9), %s1277_s1, 256, %s248_s24, %s234_s12, %s1039_s30, %s1039_s30, %s1040_s5  }
  0x59   : > { %p1290_p1 = scmp.ne.s32.totalorder %s1287_s23, 0 }
  0x5a   : > { %s261_s8 = sand.u32 (!%p1290_p1), 1, %s1023_s16   ;;  %p1291_p10 = scmp.ne.s32.totalorder (!%p1290_p1), %s1286_s22, 0 }
  0x5b   : > { %259 = sbr.rel (%p1290_p1) target bundleno = 387 (0x183), region = 36  ;;  %s1200_s9 = sshll.u32 (!%p1290_p1), %s261_s8, 4 }
  0x5c   : > { %s262_s10 = scalar_lea.sflag (!%p1290_p1), [#allocation5], %s261_s8  ;;  %s265_s15 = scalar_lea.vmem (!%p1290_p1), [#allocation4], %s1200_s9 }
  0x60   : > { %1001 = dma.done.wait (%p1291_p10), %s262_s10, 256  }
  0x61   : > { %1003 = vsyncadd (%p1291_p10), %s262_s10, 4294967040  ;;  %s270_s30 = sand.u32 1, %s720_s20   ;;  %s274_s5 = scalar_lea.vmem [#allocation6], %s1200_s9 }
  0x62   : > { %s271_s23 = scalar_lea.sflag [#allocation7], %s270_s30 }
  0x63   : > { %1005 = dma.done.wait (%p1291_p10), %s271_s23, 256  }
  0x64   : > { %1007 = vsyncadd (%p1291_p10), %s271_s23, 4294967040  ;;  %p1292_p9 = scmp.ne.s32.totalorder %s1285_s21, 0 }
  0x66   : > { %1009 = dma.done.wait (%p1292_p9), [#allocation7], 256  }
  0x67   : > { %1011 = vsyncadd (%p1292_p9), [#allocation7], 4294967040 }
  0x68   : > { %1013 = dma.done.wait (%p1292_p9), [#allocation10], 256  }
  0x69   : > { %1015 = vsyncadd (%p1292_p9), [#allocation10], 4294967040  ;;  %vm327_vm0 = vcmask 122880   ;;  %p319_p4 = scmp.lt.s32.totalorder %s1027_s17, 1  ;;  %s738_s20 = sshll.u32 %s1027_s17, 4  ;;  %v1043_v0 = vmov 0.0  }
  0x6a   : > { %328 = vst.msk [vmem:[#allocation2] sm:$0x1] %vm327_vm0, %v1043_v0  ;;  %329 = vst.msk [vmem:[#allocation3] sm:$0x1] %vm327_vm0, %v1043_v0  ;;  %s1226_s22 = ssub.s32 16, %s738_s20  ;;  %vm337_vm1 = vcmask 261120  }
  0x6b   : > { %s1299_s17 = smov (!%p319_p4, %s1027_s17), 1  ;;  %v336_v1 = vld [vmem:[#allocation8 + $0x8] sm:$0xff]  ;;  %v430_v2 = vld [vmem:[#allocation9 + $0x8] sm:$0xff]  ;;  %v335_v3 = vld [vmem:[#allocation8] sm:$0xff]  ;;  %p747_p5 = scmp.lt.s32.totalorder %s1226_s22, 16 }
  0x6c   : > { %s737_s14 = sshll.u32 %s1299_s17, 1  ;;  %762 = vmatprep.subr.msk.mxu0 %vm337_vm1, %v336_v1  ;;  %769 = vmatprep.subr.msk.mxu1 %vm337_vm1, %v430_v2  ;;  %v429_v4 = vld [vmem:[#allocation9] sm:$0xff]  ;;  %v334_v7 = vld [vmem:[%s265_s15 + $0x8] sm:$0xff] }
  0x6d   : > { %s1232_s12 = scalar_lea.vmem %s1280_s4, %s737_s14  ;;  %v333_v5 = vld [vmem:[%s265_s15] sm:$0xff]  ;;  %763 = vmatpush3.xpose.msk.msra.mxu0 %vm337_vm1, %v336_v1  ;;  %770 = vmatpush3.xpose.msk.msra.mxu1 %vm337_vm1, %v430_v2  ;;  %v428_v8 = vld [vmem:[%s274_s5 + $0x8] sm:$0xff] }
  0x6e   : > { %v427_v6 = vld [vmem:[%s274_s5] sm:$0xff]  ;;  %764 = vmatprep.subr.msk.mxu0 %vm337_vm1, %v335_v3  ;;  %771 = vmatprep.subr.msk.mxu1 %vm337_vm1, %v429_v4 }
  0x6f   : > { %766 = vmatprep.mubr.msk.f32.mxu0 %vm337_vm1, %v333_v5  ;;  %773 = vmatprep.mubr.msk.f32.mxu1 %vm337_vm1, %v427_v6 }
  0x71   : > { %765 = vmatpush3.xpose.msk.msra.mxu0 %vm337_vm1, %v335_v3  ;;  %772 = vmatpush3.xpose.msk.msra.mxu1 %vm337_vm1, %v429_v4 }
  0x74   : > { %767 = vmatmul.mubr.msk.f32.vlgmr.msra.gmra.mxu0 %vm337_vm1, %v334_v7  ;;  %774 = vmatmul.mubr.msk.f32.vlgmr.msra.gmra.mxu1 %vm337_vm1, %v428_v8 }
 0x134   : > { %v768_v9 = vpop.f32.mrf.mxu0  ;;  %v775_v10 = vpop.f32.mrf.mxu1 }
 0x135   : > { %860 = vtanh.f32 %v768_v9 }
 0x136   : > { %862 = vtanh.f32 %v775_v10  ;;  %v416_v11 = vpop.f32.mrf.mxu0  ;;  %v509_v12 = vpop.f32.mrf.mxu1 }
 0x137   : > { %864 = vtanh.f32 %v416_v11 }
 0x138   : > { %866 = vtanh.f32 %v509_v12 }
 0x141   : > { %523 = sbr.rel (%p747_p5) target bundleno = 345 (0x159), region = 60 }
 0x142   : > { %v861_v13 = vpop.eup %860 }
 0x143   : > { %v863_v14 = vpop.eup %862 }
 0x144   : > { %v865_v15 = vpop.eup %864 }
 0x145   : > { %v867_v16 = vpop.eup %866 }
 0x146   : > { %vm525_vm2 = vcmask 130048   ;;  %v524_v33 = vld [vmem:[#allocation2] sm:$0x1]  ;;  %v538_v34 = vld [vmem:[#allocation3] sm:$0x1] }
 0x147   : > { %v526_v17 = vsel %vm525_vm2, %v865_v15, 0.0  ;;  %v527_v18 = vsel %vm525_vm2, %v861_v13, 0.0  ;;  %v539_v19 = vsel %vm525_vm2, %v867_v16, 0.0  ;;  %v540_v20 = vsel %vm525_vm2, %v863_v14, 0.0 }
 0x148   : > { %v528_v21 = vadd.f32 %v527_v18, %v526_v17  ;;  %v541_v22 = vadd.f32 %v540_v20, %v539_v19 }
 0x14a   : > { %v529_v23 = vrot.slane %v528_v21, 4  ;;  %v542_v24 = vrot.slane %v541_v22, 4 }
 0x14c   : > { %v530_v25 = vadd.f32 %v529_v23, %v528_v21  ;;  %v543_v26 = vadd.f32 %v542_v24, %v541_v22 }
 0x14e   : > { %v531_v27 = vrot.slane %v530_v25, 2  ;;  %v544_v28 = vrot.slane %v543_v26, 2 }
 0x150   : > { %v532_v29 = vadd.f32 %v531_v27, %v530_v25  ;;  %v545_v30 = vadd.f32 %v544_v28, %v543_v26 }
 0x152   : > { %v533_v31 = vrot.slane %v532_v29, 1  ;;  %v546_v32 = vrot.slane %v545_v30, 1 }
 0x154   : > { %v534_v35 = vadd.f32 %v533_v31, %v532_v29  ;;  %v547_v36 = vadd.f32 %v546_v32, %v545_v30 }
 0x156   : > { %v535_v37 = vadd.f32 %v534_v35, %v524_v33  ;;  %v548_v38 = vadd.f32 %v547_v36, %v538_v34 }
 0x158   : > { %537 = vst.msk [vmem:[#allocation2] sm:$0x1] %vm327_vm0, %v535_v37  ;;  %549 = vst.msk [vmem:[#allocation3] sm:$0x1] %vm327_vm0, %v548_v38 }
 0x159 PF: > { %p748_p7 = scmp.ge.s32.totalorder %s1226_s22, 16 }
 0x15b   : > { %553 = sbr.rel (%p748_p7) target bundleno = 378 (0x17a), region = 64 }
 0x160   : > { %v554_v39 = vlaneseq  ;;  %v557_v40 = vstv %s1226_s22  ;;  %vm563_vm3 = vcmask 130048   ;;  %v560_v63 = vld [vmem:[#allocation2] sm:$0x1]  ;;  %v576_v0 = vld [vmem:[#allocation3] sm:$0x1] }
 0x162   : > { %v555_v41 = vshrl.u32 %v554_v39, 7 }
 0x164   : > { %v556_v42 = vadd.s32 8, %v555_v41  ;;  %vm558_vm4 = vcmp.lt.s32.totalorder %v555_v41, %v557_v40 }
 0x165   : > { %v561_v43 = vsel %vm558_vm4, %v865_v15, 0.0  ;;  %v577_v44 = vsel %vm558_vm4, %v867_v16, 0.0 }
 0x166   : > { %vm559_vm5 = vcmp.lt.s32.totalorder %v556_v42, %v557_v40  ;;  %v564_v45 = vsel %vm563_vm3, %v561_v43, 0.0  ;;  %v579_v46 = vsel %vm563_vm3, %v577_v44, 0.0 }
 0x167   : > { %v562_v47 = vsel %vm559_vm5, %v861_v13, 0.0  ;;  %v578_v48 = vsel %vm559_vm5, %v863_v14, 0.0 }
 0x168   : > { %v565_v49 = vsel %vm563_vm3, %v562_v47, 0.0  ;;  %v580_v50 = vsel %vm563_vm3, %v578_v48, 0.0 }
 0x169   : > { %v566_v51 = vadd.f32 %v565_v49, %v564_v45  ;;  %v581_v52 = vadd.f32 %v580_v50, %v579_v46 }
 0x16b   : > { %v567_v53 = vrot.slane %v566_v51, 4  ;;  %v582_v54 = vrot.slane %v581_v52, 4 }
 0x16d   : > { %v568_v55 = vadd.f32 %v567_v53, %v566_v51  ;;  %v583_v56 = vadd.f32 %v582_v54, %v581_v52 }
 0x16f   : > { %v569_v57 = vrot.slane %v568_v55, 2  ;;  %v584_v58 = vrot.slane %v583_v56, 2 }
 0x171   : > { %v570_v59 = vadd.f32 %v569_v57, %v568_v55  ;;  %v585_v60 = vadd.f32 %v584_v58, %v583_v56 }
 0x173   : > { %v571_v61 = vrot.slane %v570_v59, 1  ;;  %v586_v62 = vrot.slane %v585_v60, 1 }
 0x175   : > { %v572_v1 = vadd.f32 %v571_v61, %v570_v59  ;;  %v587_v2 = vadd.f32 %v586_v62, %v585_v60 }
 0x177   : > { %v573_v3 = vadd.f32 %v572_v1, %v560_v63  ;;  %v588_v4 = vadd.f32 %v587_v2, %v576_v0 }
 0x179   : > { %575 = vst.msk [vmem:[#allocation2] sm:$0x1] %vm327_vm0, %v573_v3  ;;  %589 = vst.msk [vmem:[#allocation3] sm:$0x1] %vm327_vm0, %v588_v4 }
 0x17a PF: > { %vm601_vm6 = vcmask 1040384   ;;  %vm603_vm7 = vcmask 123904  }
 0x180   : > { %v593_v5 = vld [vmem:[#allocation2] sm:$0x1]  ;;  %v749_v6 = vld [vmem:[#allocation3] ss:$0 sm:$0xff] }
 0x181   : > { %v602_v7 = vsel %vm601_vm6, %v593_v5, %v749_v6 }
 0x182   : > { %604 = vst.msk [vmem:[%s1232_s12] sm:$0x3] %vm603_vm7, %v602_v7 }
 0x183 PF: > { %s21_s19 = sadd.s32 1, %s1035_s19   ;;  %s1293_s15 = smov %s1023_s16 }
 0x184   : > { %p18_p11 = scmp.ge.s32.totalorder %s21_s19, 4   ;;  %s1266_s16 = smov 0  }
 0x185   : > { %s1294_s17 = smov %s1031_s18  ;;  %s1295_s18 = smov %s1297_s11 }
 0x186   :  { %20 = sbr.rel (!%p18_p11) target bundleno = 7 (0x7), region = 113 }
 0x18b   :  { %624 = vsyncpa [#allocation5], 1 }
 0x18c   :  { %626 = vsyncpa [#allocation5 + $0x1], 1 }
 0x18d   :  { %627 = vsyncpa [#allocation7], 1 }
 0x18e   :  { %629 = vsyncpa [#allocation7 + $0x1], 1 }
 0x18f   :  { %630 = vsyncpa [#allocation10], 1 }

</bundles_post_ra>
